<compile_context>
chip_gen: v6e
topology: v6e:2x2x1
jax: 0.10.0
libtpu: 0.0.40
codegen_flags: <defaults>
</compile_context>

<pallas_src>
import functools

import jax
import jax.numpy as jnp
from jax.experimental import pallas as pl
from jax.experimental.pallas import tpu as pltpu


def _round_up(x, m):
    return ((x + m - 1) // m) * m


def _cdiv(a, b):
    return -(-a // b)


def _knn_kernel(x_ref, c2_ref, nbb_ref, *rest, feat_type, mxu_dtype):
    """One (N-tile, C-tile) of the KNN forward pass.

    x_ref  : (TN, Dp)   input tile (streamed over N)
    c2_ref : (TC, Dp)   centroids * 2, already in MXU dtype (resident / streamed over C)
    nbb_ref: (1, TC)    -(||c||^2)  (or -(1 + ||c||^2) for l2n/cl2n), f32
    rest   : (mean_ref,)? + (o_ref,)
    """
    if feat_type == "cl2n":
        mean_ref, o_ref = rest
    else:
        (o_ref,) = rest

    x = x_ref[...].astype(jnp.float32)                       # (TN, Dp)

    if feat_type == "cl2n":
        x = x - mean_ref[...]                                 # (1, Dp) broadcasts over rows

    if feat_type in ("l2n", "cl2n"):
        # rsqrt (EUP slot, ~free) + VPU multiply instead of sqrt + divide.
        inv_norm = jax.lax.rsqrt(jnp.sum(x * x, axis=1, keepdims=True))
        x = x * inv_norm

    # MXU matmul contracting the feature dim of both operands (no (D,C) transpose).
    # c2_ref already holds 2*centroids in mxu_dtype, so this IS 2 * x @ c^T.
    ab2 = jax.lax.dot_general(
        x.astype(mxu_dtype),
        c2_ref[...],
        dimension_numbers=(((1,), (1,)), ((), ())),
        preferred_element_type=jnp.float32,
    )                                                         # (TN, TC)

    # logits = -(aa + bb - 2ab) = 2ab - bb - aa. For l2n/cl2n aa == 1 is folded into nbb.
    out = ab2 + nbb_ref[...]
    if feat_type == "un":
        out = out - jnp.sum(x * x, axis=1, keepdims=True)     # (TN, 1) broadcast
    o_ref[...] = out.astype(o_ref.dtype)


def knn_classifier_forward(x, centroids, feat_mean=None, *, feat_type="l2n",
                           block_n=512, max_block_c=2048,
                           mxu_dtype=jnp.bfloat16, out_dtype=jnp.float32):
    """JAX/Pallas equivalent of KNNClassifier.forward (feat_type in {'un','l2n','cl2n'}).

    mxu_dtype: dtype of the MXU operands (accumulation always f32). bf16 default
    (full-rate MXU); pass jnp.float32 if exact near-tie distances matter.
    out_dtype: dtype of the logits written to HBM (f32 default preserves semantics;
    bf16 halves the dominant writeback stream for large C).
    """
    assert feat_type in ("un", "l2n", "cl2n"), "feat_type is wrong!!!"
    N, D = x.shape
    C, D2 = centroids.shape
    assert D == D2
    mxu_dtype = jnp.dtype(mxu_dtype)
    out_dtype = jnp.dtype(out_dtype)

    # ---------------- wrapper-side prep ----------------
    Dp = _round_up(D, 128)            # lane-aligned contraction dim
    Cp = _round_up(C, 128)            # lane-dense output stores

    c32 = centroids.astype(jnp.float32)
    if Dp != D:
        c32 = jnp.pad(c32, ((0, 0), (0, Dp - D)))
        x = jnp.pad(x, ((0, 0), (0, Dp - D)))
    if Cp != C:
        c32 = jnp.pad(c32, ((0, Cp - C), (0, 0)))

    # Per-centroid squared norms, negated (and aa==1 folded in for normalized feats).
    bb = jnp.sum(c32 * c32, axis=1)                                    # (Cp,)
    neg_bb = (-(1.0 + bb) if feat_type in ("l2n", "cl2n") else -bb).reshape(1, Cp)

    # Pre-scale by 2 and pre-cast to the MXU dtype ONCE (not per N-tile in the kernel).
    c2 = (2.0 * c32).astype(mxu_dtype)                                 # (Cp, Dp)

    # ---------------- tile sizes ----------------
    x_isz = jnp.dtype(x.dtype).itemsize
    pack_n = max(8, (8 * 4) // x_isz)                 # f32 -> 8, bf16 -> 16 sublane pack
    tn = min(_round_up(block_n, pack_n), _round_up(N, pack_n))
    tc = min(Cp, _round_up(max_block_c, 128))

    # Per-generation VMEM budget (v7x has only 64 MiB per TensorCore).
    try:
        vmem_phys = int(pltpu.get_tpu_info().vmem_capacity_bytes)
    except Exception:
        vmem_phys = 64 << 20
    budget = (vmem_phys * 3) // 4

    mxu_isz = mxu_dtype.itemsize
    out_isz = out_dtype.itemsize

    def footprint(tn_, tc_):
        res_bufs = 1 if _cdiv(Cp, tc_) == 1 else 2     # residents single-buffered
        fp = 2 * tn_ * Dp * x_isz                      # x (double-buffered)
        fp += res_bufs * tc_ * Dp * mxu_isz            # centroids*2 (mxu dtype)
        fp += res_bufs * tc_ * 4                       # neg_bb
        fp += 2 * tn_ * tc_ * out_isz                  # output tile
        if feat_type == "cl2n":
            fp += Dp * 4                               # feat_mean
        # in-kernel temporaries (x in f32 + mxu dtype, f32 accumulator tile)
        fp += tn_ * Dp * (4 + mxu_isz) + tn_ * tc_ * 4
        return fp

    # Shrink C tile first (keep the N tile large), then the N tile, until it fits.
    while footprint(tn, tc) > budget and tc > 512:
        tc = max(512, _round_up(tc // 2, 128))
    while footprint(tn, tc) > budget and tn > pack_n:
        tn = max(pack_n, _round_up(tn // 2, pack_n))

    n_n_tiles = _cdiv(N, tn)
    n_c_tiles = _cdiv(Cp, tc)
    single_c = n_c_tiles == 1
    grid = (n_n_tiles, n_c_tiles)

    def _spec(shape, index_map, resident):
        if resident:
            return pl.BlockSpec(shape, index_map, pipeline_mode=pl.Buffered(1))
        return pl.BlockSpec(shape, index_map)

    in_specs = [
        pl.BlockSpec((tn, Dp), lambda i, j: (i, 0)),             # x tile (streamed over N)
        _spec((tc, Dp), lambda i, j: (j, 0), single_c),          # centroids*2
        _spec((1, tc), lambda i, j: (0, j), single_c),           # neg_bb
    ]
    args = [x, c2, neg_bb]
    if feat_type == "cl2n":
        assert feat_mean is not None and feat_mean.shape == (D,)
        fm = feat_mean.astype(jnp.float32).reshape(1, D)
        if Dp != D:
            fm = jnp.pad(fm, ((0, 0), (0, Dp - D)))
        in_specs.append(_spec((1, Dp), lambda i, j: (0, 0), True))
        args.append(fm)

    # vmem_limit: actual footprint + slack, never below the footprint, capped per-gen.
    fp = footprint(tn, tc)
    vmem_limit = int(min(budget, max(fp + (4 << 20), 16 << 20)))

    cost = pl.CostEstimate(
        flops=2 * N * Cp * Dp,
        transcendentals=N if feat_type in ("l2n", "cl2n") else 0,
        bytes_accessed=(N * Dp * x_isz + Cp * Dp * mxu_isz + Cp * 4 + N * Cp * out_isz),
    )

    kernel = functools.partial(_knn_kernel, feat_type=feat_type, mxu_dtype=mxu_dtype)

    out = pl.pallas_call(
        kernel,
        out_shape=jax.ShapeDtypeStruct((N, Cp), out_dtype),      # ragged last N tile masked
        grid=grid,
        in_specs=in_specs,
        out_specs=pl.BlockSpec((tn, tc), lambda i, j: (i, j)),
        compiler_params=pltpu.CompilerParams(
            dimension_semantics=("parallel", "parallel"),
            vmem_limit_bytes=vmem_limit,
        ),
        cost_estimate=cost,
    )(*args)

    if Cp != C:
        out = out[:, :C]
    return out


def _reference(x, centroids, feat_mean, feat_type="l2n"):
    x = x.astype(jnp.float32)
    c = centroids.astype(jnp.float32)
    if feat_type == "cl2n":
        x = x - feat_mean
    if feat_type in ("l2n", "cl2n"):
        x = x / jnp.linalg.norm(x, axis=1, keepdims=True)
    ab = jnp.dot(x, c.T, precision=jax.lax.Precision.HIGHEST)
    aa = jnp.sum(x * x, axis=1, keepdims=True)
    bb = jnp.sum(c * c, axis=1, keepdims=True)
    return -(aa + bb.T - 2.0 * ab)


if __name__ == "__main__":
    # Shapes consistent with the module: batch=8 samples, feat_dim=128, num_classes=48.
    N, D, C = 8, 128, 48
    key = jax.random.PRNGKey(0)
    kx, kc, km = jax.random.split(key, 3)

    x = jax.random.normal(kx, (N, D), dtype=jnp.float32)
    centroids = jax.random.normal(kc, (C, D), dtype=jnp.float32)  # torch.randn in __init__
    feat_mean = jax.random.normal(km, (D,), dtype=jnp.float32)

    ok = True
    for ft in ("l2n", "cl2n", "un"):
        logits = knn_classifier_forward(x, centroids, feat_mean, feat_type=ft)
        jax.block_until_ready(logits)
        ref = _reference(x, centroids, feat_mean, feat_type=ft)
        ok &= logits.shape == (N, C)
        # bf16 MXU operands (default) -> bf16-level matmul error; logits |.| ~ 1e2.
        ok &= bool(jnp.allclose(logits, ref, atol=0.3, rtol=2e-2))

    # Also exercise the f32-operand MXU path.
    logits_f32 = knn_classifier_forward(x, centroids, feat_mean, feat_type="l2n",
                                        mxu_dtype=jnp.float32)
    jax.block_until_ready(logits_f32)
    ref = _reference(x, centroids, feat_mean, feat_type="l2n")
    ok &= bool(jnp.allclose(logits_f32, ref, atol=0.3, rtol=2e-2))

    assert ok
    print("KERNEL_OK")
</pallas_src>

<mosaic_0001>
module attributes {stable_mosaic.version = 11 : i64} {
  func.func @_knn_kernel(%arg0: i32, %arg1: i32, %arg2: memref<8x128xf32, #tpu.memory_space<vmem>>, %arg3: memref<128x128xbf16, #tpu.memory_space<vmem>>, %arg4: memref<1x128xf32, #tpu.memory_space<vmem>>, %arg5: memref<8x128xf32, #tpu.memory_space<vmem>>) attributes {dimension_semantics = [#tpu.dimension_semantics<parallel>, #tpu.dimension_semantics<parallel>], iteration_bounds = array<i64: 1, 1>, scalar_prefetch = 0 : i64, scratch_operands = 0 : i64, tpu.core_type = #tpu.core_type<tc>, window_params = [{transform_indices = @transform_0, window_bounds = array<i64: 8, 128>}, {pipeline_mode = #tpu.pipeline_mode<synchronous>, transform_indices = @transform_1, window_bounds = array<i64: 128, 128>}, {pipeline_mode = #tpu.pipeline_mode<synchronous>, transform_indices = @transform_2, window_bounds = array<i64: 1, 128>}, {transform_indices = @transform_3, window_bounds = array<i64: 8, 128>}]} {
    %c0 = arith.constant 0 : index
    %c0_0 = arith.constant 0 : index
    %0 = vector.load %arg2[%c0, %c0_0] : memref<8x128xf32, #tpu.memory_space<vmem>>, vector<8x128xf32>
    %1 = arith.mulf %0, %0 : vector<8x128xf32>
    %cst = arith.constant dense<0.000000e+00> : vector<8xf32>
    %2 = vector.multi_reduction <add>, %1, %cst [1] : vector<8x128xf32> to vector<8xf32>
    %3 = vector.shape_cast %2 : vector<8xf32> to vector<8x1xf32>
    %4 = math.rsqrt %3 : vector<8x1xf32>
    %5 = vector.broadcast %4 : vector<8x1xf32> to vector<8x128xf32>
    %6 = arith.mulf %0, %5 : vector<8x128xf32>
    %7 = arith.truncf %6 : vector<8x128xf32> to vector<8x128xbf16>
    %c0_1 = arith.constant 0 : index
    %c0_2 = arith.constant 0 : index
    %8 = vector.load %arg3[%c0_1, %c0_2] : memref<128x128xbf16, #tpu.memory_space<vmem>>, vector<128x128xbf16>
    %cst_3 = arith.constant dense<0.000000e+00> : vector<8x128xf32>
    %9 = tpu.matmul %7, %8, %cst_3 {dimension_numbers = #tpu.dot_dimension_numbers<[1], [1], [0], [0], [0, 0, 1, 0], [], []>} : vector<8x128xbf16>, vector<128x128xbf16>, vector<8x128xf32> -> vector<8x128xf32>
    %c0_4 = arith.constant 0 : index
    %c0_5 = arith.constant 0 : index
    %10 = vector.load %arg4[%c0_4, %c0_5] : memref<1x128xf32, #tpu.memory_space<vmem>>, vector<1x128xf32>
    %11 = vector.broadcast %10 : vector<1x128xf32> to vector<8x128xf32>
    %12 = arith.addf %9, %11 : vector<8x128xf32>
    %c0_6 = arith.constant 0 : index
    %c0_7 = arith.constant 0 : index
    %13 = vector.load %arg5[%c0_6, %c0_7] : memref<8x128xf32, #tpu.memory_space<vmem>>, vector<8x128xf32>
    tpu.vector_store %arg5[%c0_6, %c0_7], %12 {strides = array<i32>} : memref<8x128xf32, #tpu.memory_space<vmem>>, vector<8x128xf32>,
    return
  }
  func.func @transform_0(%arg0: i32, %arg1: i32) -> (i32, i32) {
    %c0_i32 = arith.constant 0 : i32
    %c0_i32_0 = arith.constant 0 : i32
    return %arg0, %c0_i32 : i32, i32
  }
  func.func @transform_1(%arg0: i32, %arg1: i32) -> (i32, i32) {
    %c0_i32 = arith.constant 0 : i32
    %c0_i32_0 = arith.constant 0 : i32
    return %arg1, %c0_i32 : i32, i32
  }
  func.func @transform_2(%arg0: i32, %arg1: i32) -> (i32, i32) {
    %c0_i32 = arith.constant 0 : i32
    %c0_i32_0 = arith.constant 0 : i32
    return %c0_i32, %arg1 : i32, i32
  }
  func.func @transform_3(%arg0: i32, %arg1: i32) -> (i32, i32) {
    %c0_i32 = arith.constant 0 : i32
    return %arg0, %arg1 : i32, i32
  }
}

</mosaic_0001>

<bundles_post_ra>
// kernel: tpu_custom_call.1
= control target key start
LH: loop header
LB: loop body
LE: loop exit
PB: predicated region body
PF: predicated region fallthrough
CT: control target
= control target key end

     0   :  { %8 = vsyncpa [#allocation3], 0  ;;  %s337_s0 = inlined_call_operand.hbm [shape: f32[8,128], index: 0, kind: input, shape index: {}]   ;;  %s338_s1 = inlined_call_operand.hbm [shape: bf16[128,128], index: 1, kind: input, shape index: {}]   ;;  %s339_s2 = inlined_call_operand.vmem [shape: f32[1,128], index: 2, kind: input, shape index: {}]   ;;  %s340_s3 = inlined_call_operand.hbm [shape: f32[8,128], index: 3, kind: output, shape index: {}]  }
   0x1   :  { %9 = vsyncpa [#allocation6], 0 }
   0x2   :  { %10 = vsyncpa [#allocation4], 0  ;;  %s298_s12 = smov [#allocation2]   ;;  %s299_s14 = smov [#allocation5]  }
   0x3   :  { %s17_s13 = sshll.u32 %s298_s12, 4  ;;  %s26_s15 = sshll.u32 %s299_s14, 4  ;;  %s18_s13 = int_to_ptr.vmem [resolvable:$true] %s17_s13  ;;  %s27_s15 = int_to_ptr.vmem [resolvable:$true] %s26_s15 }
   0x4   :  { %s240_s16 = scalar_lea.vmem %s18_s13, 128  ;;  %p245_p1 = scmp.lt.s32.totalorder %s18_s13, %s18_s13 }
   0x5   :  { %p241_p0 = scmp.ne.s32.totalorder %s18_s13, %s240_s16  ;;  %p246_p2 = scmp.lt.s32.totalorder %s240_s16, %s240_s16 }
   0x7   :  { %p247_p3 = por %p246_p2, %p245_p1 }
   0x9   :  { %p248_p4 = pnand %p247_p3, %p241_p0 }
   0xb   :  { %251 = shalt.err (!%p248_p4)
}
   0xc   :  { %20 = dma.hbm_to_vmem [thread:$0]  %s337_s0, 128, %s18_s13, [#allocation3]  }
   0xd   :  { %s260_s19 = scalar_lea.vmem %s27_s15, 1024  ;;  %p265_p6 = scmp.lt.s32.totalorder %s27_s15, %s27_s15 }
   0xe   :  { %p261_p5 = scmp.ne.s32.totalorder %s27_s15, %s260_s19  ;;  %p266_p7 = scmp.lt.s32.totalorder %s260_s19, %s260_s19 }
  0x10   :  { %p267_p8 = por %p266_p7, %p265_p6 }
  0x12   :  { %p268_p9 = pnand %p267_p8, %p261_p5 }
  0x14   :  { %271 = shalt.err (!%p268_p9)
}
  0x15   :  { %s300_s20 = smov 64   ;;  %s301_s21 = smov 4  }
  0x16   :  { %32 = dma.hbm_to_vmem [thread:$0]  %s338_s1, 1024, %s27_s15, [#allocation6], %s300_s20, %s300_s20, %s301_s21  }
  0x17   :  { %292 = dma.done.wait [#allocation3], 128  }
  0x18   :  { %293 = vsyncadd [#allocation3], 4294967168 }
  0x19   :  { %294 = dma.done.wait [#allocation6], 1024  }
  0x1a   :  { %295 = vsyncadd [#allocation6], 4294966272  ;;  %v302_v0 = vmov 0.0   ;;  %v42_v1 = vld [vmem:[#allocation2] sm:$0xff]  ;;  %v223_v4 = vld [vmem:[#allocation5 + $0x30] sm:$0xff]   ;;  %vm303_vm0 = vmmov 0  }
  0x1b   :  { %195 = vmatprep.subr.bf16.mxu0 %v302_v0  ;;  %v43_v2 = vmul.f32 %v42_v1, %v42_v1  ;;  %v222_v3 = vld [vmem:[#allocation5 + $0x38] sm:$0xff]   ;;  %211 = vmatprep.mubr.msk.bf16.mxu0 %vm303_vm0, %v302_v0  ;;  %v224_v5 = vld [vmem:[#allocation5 + $0x28] sm:$0xff]   ;;  %v225_v6 = vld [vmem:[#allocation5 + $0x20] sm:$0xff]   ;;  %s304_s24 = smov [#allocation7]  }
  0x1c   :  { %196 = vmatpush3.bf16.xpose.msra.mxu0 %v222_v3  ;;  %v226_v7 = vld [vmem:[#allocation5 + $0x18] sm:$0xff]   ;;  %v227_v8 = vld [vmem:[#allocation5 + $0x10] sm:$0xff]   ;;  %v228_v9 = vld [vmem:[#allocation5 + $0x8] sm:$0xff]   ;;  %s167_s25 = sshll.u32 %s304_s24, 4  ;;  %s168_s25 = int_to_ptr.vmem [resolvable:$true] %s167_s25 }
  0x1d   :  { %44 = vadd.xlane.f32.xlu0 %v43_v2  ;;  %197 = vmatprep.subr.bf16.mxu0 %v302_v0  ;;  %v229_v10 = vld [vmem:[#allocation5] sm:$0xff]   ;;  %v177_v15 = vld [vmem:[%s339_s2] ss:$0 sm:$0xff]  ;;  %s272_s26 = scalar_lea.vmem %s168_s25, 128  ;;  %p277_p11 = scmp.lt.s32.totalorder %s168_s25, %s168_s25 }
  0x1e   :  { %p273_p10 = scmp.ne.s32.totalorder %s168_s25, %s272_s26  ;;  %p278_p12 = scmp.lt.s32.totalorder %s272_s26, %s272_s26 }
  0x20   :  { %p279_p13 = por %p278_p12, %p277_p11 }
  0x22   :  { %p280_p0 = pnand %p279_p13, %p273_p10 }
  0x24   :  { %198 = vmatpush3.bf16.xpose.msra.mxu0 %v223_v4 }
  0x25   :  { %199 = vmatprep.subr.bf16.mxu0 %v302_v0 }
  0x2c   :  { %200 = vmatpush3.bf16.xpose.msra.mxu0 %v224_v5 }
  0x2d   :  { %201 = vmatprep.subr.bf16.mxu0 %v302_v0 }
  0x34   :  { %202 = vmatpush3.bf16.xpose.msra.mxu0 %v225_v6 }
  0x35   :  { %203 = vmatprep.subr.bf16.mxu0 %v302_v0 }
  0x3c   :  { %204 = vmatpush3.bf16.xpose.msra.mxu0 %v226_v7 }
  0x3d   :  { %205 = vmatprep.subr.bf16.mxu0 %v302_v0 }
  0x44   :  { %206 = vmatpush3.bf16.xpose.msra.mxu0 %v227_v8 }
  0x45   :  { %207 = vmatprep.subr.bf16.mxu0 %v302_v0 }
  0x4c   :  { %208 = vmatpush3.bf16.xpose.msra.mxu0 %v228_v9 }
  0x4d   :  { %209 = vmatprep.subr.bf16.mxu0 %v302_v0 }
  0x54   :  { %210 = vmatpush3.bf16.xpose.msra.mxu0 %v229_v10 }
  0xa6   :  { %v45_v11 = vpop.xlane.xlu0 %44 }
  0xa7   :  { %230 = vrsqrt.f32 %v45_v11 }
  0xb4   :  { %v231_v12 = vpop.eup %230 }
  0xb5   :  { %v47_v13 = vmul.f32 %v231_v12, %v42_v1 }
  0xb7   :  { %v48_v14 = vpack.c.bf16 %v47_v13, %v47_v13 }
  0xb9   :  { %212 = vmatmul.mubr.bf16.vlgmr.msra.gmra.mxu0 %v48_v14 }
 0x179   :  { %v154_v16 = vpop.f32.mrf.mxu0 }
 0x17a   :  { %v155_v17 = vadd.f32 %v177_v15, %v154_v16 }
 0x17b   :  { %v213_v18 = vpop.f32.mrf.mxu0 }
 0x17c   :  { %160 = vst [vmem:[#allocation7] sm:$0xff] %v155_v17 }
 0x17d   :  { %v157_v19 = vpop.f32.mrf.mxu0 }
 0x17e   :  { %283 = shalt.err (!%p280_p0)
}
 0x17f   :  { %170 = dma.vmem_to_hbm [thread:$0]  %s168_s25, 128, %s340_s3, [#allocation4]   ;;  %v214_v20 = vpop.f32.mrf.mxu0 }
 0x180   :  { %296 = dma.done.wait [#allocation4], 128  }
 0x181   :  { %297 = vsyncadd [#allocation4], 4294967168 }
 0x182   :  { %174 = vsyncpa [#allocation3], 1 }
 0x183   :  { %175 = vsyncpa [#allocation6], 1 }
 0x184   :  { %176 = vsyncpa [#allocation4], 1 }

</bundles_post_ra>
